<compile_context>
chip_gen: v6e
topology: v6e:2x2x1
jax: 0.10.0
libtpu: 0.0.40
codegen_flags: <defaults>
</compile_context>

<pallas_src>
import functools

import jax
import jax.numpy as jnp
from jax.experimental import pallas as pl
from jax.experimental.pallas import tpu as pltpu


def _pos_emb_kernel(pos_ref, inv_freq_ref, out_ref, *, half):
    # pos_ref:      [TILE_L, 1]       f32  (per-tile slice of pos_seq)
    # inv_freq_ref: [1, half]         f32  (resident in VMEM across all steps)
    # out_ref:      [TILE_L, 2*half]  out_dtype
    # Outer product (torch.ger): [TILE_L,1] * [1,half] -> [TILE_L,half] on VPU.
    sinusoid = pos_ref[...] * inv_freq_ref[...]
    # Two direct lane-aligned slice stores (no concatenate temp). With
    # half % 128 == 0 both halves are unmasked, lane-dense vst.
    out_ref[:, :half] = jnp.sin(sinusoid).astype(out_ref.dtype)
    out_ref[:, half:] = jnp.cos(sinusoid).astype(out_ref.dtype)


def positional_embedding(pos_seq, inv_freq, batch_size=2, *, tile_l=4096,
                         out_dtype=jnp.float32, use_kernel=None,
                         small_bytes_threshold=1 << 20):
    """JAX/Pallas equivalent of PositionalEmbedding.forward.

    pos_seq:  [L]        float
    inv_freq: [demb//2]  float
    returns:  [L, batch_size, demb]  (or [L, 1, demb] if batch_size is None)
    """
    L = pos_seq.shape[0]
    half = inv_freq.shape[0]
    demb = 2 * half
    out_itemsize = jnp.dtype(out_dtype).itemsize

    pos_f32 = pos_seq.astype(jnp.float32)
    inv_f32 = inv_freq.astype(jnp.float32)

    if use_kernel is None:
        # Small outputs: custom-call dispatch + pipeline prologue dwarf the
        # work; let XLA fuse the pure-jnp version into the consumer.
        use_kernel = (L * demb * out_itemsize) >= small_bytes_threshold

    if not use_kernel:
        sinusoid = pos_f32[:, None] * inv_f32[None, :]
        pos_emb = jnp.concatenate(
            [jnp.sin(sinusoid), jnp.cos(sinusoid)], axis=-1
        ).astype(out_dtype)
    else:
        # Pad half to a multiple of 128 lanes so both slice stores stay
        # lane-dense (unmasked vst) for non-default demb.
        half_pad = ((half + 127) // 128) * 128
        if half_pad != half:
            inv_f32 = jnp.pad(inv_f32, (0, half_pad - half))
        demb_pad = 2 * half_pad

        # Tile over L. Multiple of 16 rows so bf16 output (min tile (16,128))
        # is legal too; a single full-array block is used when L fits.
        sub = 16 if out_itemsize == 2 else 8
        if L <= tile_l:
            tl = L  # single block; full-array-dim exemption handles any L
        else:
            tl = max(sub, (int(tile_l) // sub) * sub)
        grid = (pl.cdiv(L, tl),)

        pos2d = pos_f32.reshape(L, 1)
        inv2d = inv_f32.reshape(1, half_pad)

        cost = pl.CostEstimate(
            flops=L * half_pad,                 # outer-product multiplies
            transcendentals=2 * L * half_pad,   # sin + cos per element
            bytes_accessed=L * demb_pad * out_itemsize + L * 4 + half_pad * 4,
        )

        # VMEM budget: double-buffered output tile + double-buffered pos tile
        # (its lane dim pads (tl,1)->(tl,128) in VMEM) + resident inv_freq.
        vmem_need = (2 * tl * demb_pad * out_itemsize
                     + 2 * tl * 128 * 4
                     + 2 * 8 * half_pad * 4)
        vmem_limit = int(min(max(vmem_need + (4 << 20), 16 << 20), 64 << 20))

        kernel = functools.partial(_pos_emb_kernel, half=half_pad)
        pe = pl.pallas_call(
            kernel,
            out_shape=jax.ShapeDtypeStruct((L, demb_pad), out_dtype),
            grid=grid,
            in_specs=[
                # per-tile slice of pos_seq
                pl.BlockSpec((tl, 1), lambda i: (i, 0)),
                # inv_freq pinned in VMEM (same block every step -> no re-DMA)
                pl.BlockSpec((1, half_pad), lambda i: (0, 0)),
            ],
            out_specs=pl.BlockSpec((tl, demb_pad), lambda i: (i, 0)),
            compiler_params=pltpu.CompilerParams(
                # On v7x, verify both TensorCores receive row tiles; if only
                # one TC runs, switch this axis to pltpu.CORE_PARALLEL.
                dimension_semantics=("parallel",),
                vmem_limit_bytes=vmem_limit,
            ),
            cost_estimate=cost,
        )(pos2d, inv2d)

        if half_pad != half:
            pos_emb = jnp.concatenate(
                [pe[:, :half], pe[:, half_pad:half_pad + half]], axis=-1)
        else:
            pos_emb = pe

    if batch_size is not None:
        # PyTorch .expand() is a view; keep it a lazy broadcast XLA fuses into
        # consumers rather than materializing B copies of the writeback.
        return jnp.broadcast_to(pos_emb[:, None, :], (L, batch_size, demb))
    return pos_emb[:, None, :]


def make_inv_freq(demb=256, dtype=jnp.float32):
    # Matches the PyTorch __init__:
    # inv_freq = 1 / 10000 ** (arange(0, demb, 2) / demb)
    return (1.0 / (10000.0 ** (jnp.arange(0.0, demb, 2.0) / demb))).astype(dtype)


if __name__ == "__main__":
    key = jax.random.PRNGKey(0)

    demb = 256          # module default (half = 128 -> lane-dense stores)
    L = 8               # small sequence length
    batch_size = 2

    inv_freq = make_inv_freq(demb)
    pos_seq = jax.random.uniform(key, (L,), dtype=jnp.float32) * 10.0

    # --- Pallas path (forced, so the kernel is exercised at small L) --------
    fn = jax.jit(functools.partial(positional_embedding,
                                   batch_size=batch_size, use_kernel=True))
    out = jax.block_until_ready(fn(pos_seq, inv_freq))

    sinusoid = pos_seq[:, None] * inv_freq[None, :]
    ref = jnp.concatenate([jnp.sin(sinusoid), jnp.cos(sinusoid)], axis=-1)
    ref_b = jnp.broadcast_to(ref[:, None, :], (L, batch_size, demb))
    assert out.shape == (L, batch_size, demb)
    assert jnp.allclose(out, ref_b, atol=1e-5, rtol=1e-5)

    # --- Multi-tile grid + partial trailing block (still small) -------------
    L2 = 40
    pos2 = jax.random.uniform(jax.random.PRNGKey(1), (L2,), jnp.float32) * 10.0
    fn2 = jax.jit(functools.partial(positional_embedding, batch_size=None,
                                    tile_l=16, use_kernel=True))
    out2 = jax.block_until_ready(fn2(pos2, inv_freq))
    s2 = pos2[:, None] * inv_freq[None, :]
    ref2 = jnp.concatenate([jnp.sin(s2), jnp.cos(s2)], axis=-1)[:, None, :]
    assert out2.shape == (L2, 1, demb)
    assert jnp.allclose(out2, ref2, atol=1e-5, rtol=1e-5)

    # --- bf16 output path (writeback-halving option) ------------------------
    L3 = 16
    pos3 = jax.random.uniform(jax.random.PRNGKey(2), (L3,), jnp.float32) * 10.0
    fn3 = jax.jit(functools.partial(positional_embedding, batch_size=None,
                                    out_dtype=jnp.bfloat16, use_kernel=True))
    out3 = jax.block_until_ready(fn3(pos3, inv_freq))
    s3 = pos3[:, None] * inv_freq[None, :]
    ref3 = jnp.concatenate([jnp.sin(s3), jnp.cos(s3)], axis=-1)[:, None, :]
    assert out3.dtype == jnp.bfloat16
    assert jnp.allclose(out3.astype(jnp.float32), ref3, atol=2e-2, rtol=2e-2)

    # --- Auto small-L fast path (bypasses pallas_call) -----------------------
    out4 = jax.block_until_ready(
        jax.jit(functools.partial(positional_embedding, batch_size=batch_size))(
            pos_seq, inv_freq))
    assert jnp.allclose(out4, ref_b, atol=1e-5, rtol=1e-5)

    print("KERNEL_OK")
</pallas_src>

<mosaic_0001>
module attributes {stable_mosaic.version = 11 : i64} {
  func.func @_pos_emb_kernel(%arg0: i32, %arg1: memref<8x1xf32, #tpu.memory_space<vmem>>, %arg2: memref<1x128xf32, #tpu.memory_space<vmem>>, %arg3: memref<8x256xf32, #tpu.memory_space<vmem>>) attributes {dimension_semantics = [#tpu.dimension_semantics<parallel>], iteration_bounds = array<i64: 1>, scalar_prefetch = 0 : i64, scratch_operands = 0 : i64, tpu.core_type = #tpu.core_type<tc>, window_params = [{transform_indices = @transform_0, window_bounds = array<i64: 8, 1>}, {pipeline_mode = #tpu.pipeline_mode<synchronous>, transform_indices = @transform_1, window_bounds = array<i64: 1, 128>}, {transform_indices = @transform_2, window_bounds = array<i64: 8, 256>}]} {
    %c0 = arith.constant 0 : index
    %c0_0 = arith.constant 0 : index
    %0 = vector.load %arg1[%c0, %c0_0] : memref<8x1xf32, #tpu.memory_space<vmem>>, vector<8x1xf32>
    %c0_1 = arith.constant 0 : index
    %c0_2 = arith.constant 0 : index
    %1 = vector.load %arg2[%c0_1, %c0_2] : memref<1x128xf32, #tpu.memory_space<vmem>>, vector<1x128xf32>
    %2 = vector.broadcast %0 : vector<8x1xf32> to vector<8x128xf32>
    %3 = vector.broadcast %1 : vector<1x128xf32> to vector<8x128xf32>
    %4 = arith.mulf %2, %3 : vector<8x128xf32>
    %5 = math.sin %4 : vector<8x128xf32>
    %c0_3 = arith.constant 0 : index
    %c0_4 = arith.constant 0 : index
    %6 = vector.load %arg3[%c0_3, %c0_4] : memref<8x256xf32, #tpu.memory_space<vmem>>, vector<8x128xf32>
    tpu.vector_store %arg3[%c0_3, %c0_4], %5 {strides = array<i32>} : memref<8x256xf32, #tpu.memory_space<vmem>>, vector<8x128xf32>,
    %7 = math.cos %4 : vector<8x128xf32>
    %c0_5 = arith.constant 0 : index
    %c128 = arith.constant 128 : index
    %8 = vector.load %arg3[%c0_5, %c128] : memref<8x256xf32, #tpu.memory_space<vmem>>, vector<8x128xf32>
    tpu.vector_store %arg3[%c0_5, %c128], %7 {strides = array<i32>} : memref<8x256xf32, #tpu.memory_space<vmem>>, vector<8x128xf32>,
    return
  }
  func.func @transform_0(%arg0: i32) -> (i32, i32) {
    %c0_i32 = arith.constant 0 : i32
    %c0_i32_0 = arith.constant 0 : i32
    return %arg0, %c0_i32 : i32, i32
  }
  func.func @transform_1(%arg0: i32) -> (i32, i32) {
    %c0_i32 = arith.constant 0 : i32
    %c0_i32_0 = arith.constant 0 : i32
    %c0_i32_1 = arith.constant 0 : i32
    return %c0_i32, %c0_i32_0 : i32, i32
  }
  func.func @transform_2(%arg0: i32) -> (i32, i32) {
    %c0_i32 = arith.constant 0 : i32
    %c0_i32_0 = arith.constant 0 : i32
    return %arg0, %c0_i32 : i32, i32
  }
}

</mosaic_0001>

<bundles_post_ra>
// kernel: positional_embedding.1
= control target key start
LH: loop header
LB: loop body
LE: loop exit
PB: predicated region body
PF: predicated region fallthrough
CT: control target
= control target key end

     0   :  { %v263_v0 = vmov 0   ;;  %v264_v15 = vmov 683565275   ;;  %v265_v17 = vmov 2475754826   ;;  %s318_s0 = inlined_call_operand.vmem [shape: f32[8,1], index: 0, kind: input, shape index: {}]   ;;  %s319_s1 = inlined_call_operand.vmem [shape: f32[1,128], index: 1, kind: input, shape index: {}]   ;;  %s320_s2 = inlined_call_operand.vmem [shape: f32[8,256], index: 2, kind: output, shape index: {}]  }
   0x1   :  { %258 = vset.pattern.permute.xlu0 %v263_v0  ;;  %v11_v1 = vld [vmem:[%s318_s0] sm:$0xff]  ;;  %v266_v20 = vmov 2131351028   ;;  %v267_v23 = vmov 2102212464  }
   0x2   :  { %15 = vperm.xlu0 %258, %v11_v1   ;;  %v238_v2 = vld [vmem:[%s319_s1] ss:$0 sm:$0xff]  ;;  %v268_v26 = vmov 920167782   ;;  %v269_v29 = vmov 1326507024  }
  0x7d   :  { %v16_v3 = vpop.permute.xlu0 %15 }
  0x7e   :  { %v291_v4 = vmul.f32 %v238_v2, %v16_v3 }
  0x80   :  { %v28_v5 = vand.u32 2139095040, %v291_v4  ;;  %v25_v9 = vand.u32 2147483647, %v291_v4  ;;  %vm27_vm7 = vcmp.lt.s32.totalorder %v291_v4, 0  ;;  %vm117_vm15 = vweird.f32 %v291_v4 }
  0x82   :  { %v29_v6 = vshrl.u32 %v28_v5, 23  ;;  %v32_v12 = vand.u32 8388607, %v25_v9  ;;  %vm26_vm8 = vcmp.le.f32.partialorder %v25_v9, 0.7853982 }
  0x84   :  { %v239_v7 = vadd.s32 4294967169, %v29_v6  ;;  %v33_v31 = vor.u32 8388608, %v32_v12 }
  0x86   :  { %v35_v8 = vadd.s32 1, %v239_v7  ;;  %v73_v45 = vshll.u32 %v33_v31, 8 }
  0x88   :  { %vm36_vm0 = vcmp.gt.s32.totalorder %v35_v8, 0 }
  0x89   :  { %v37_v10 = vsel %vm36_vm0, %v35_v8, 0 }
  0x8a   :  { %v39_v11 = vand.u32 31, %v37_v10  ;;  %v38_v14 = vshrl.u32 %v37_v10, 5 }
  0x8c   :  { %v40_v13 = vsub.s32 32, %v39_v11  ;;  %v42_v16 = vshll.u32 %v264_v15, %v39_v11  ;;  %v45_v18 = vshll.u32 %v265_v17, %v39_v11  ;;  %v48_v22 = vshll.u32 %v266_v20, %v39_v11 }
  0x8d   :  { %v51_v25 = vshll.u32 %v267_v23, %v39_v11  ;;  %v54_v28 = vshll.u32 %v268_v26, %v39_v11  ;;  %vm57_vm1 = vcmp.lt.s32.totalorder %v38_v14, 1  ;;  %vm60_vm2 = vcmp.lt.s32.totalorder %v38_v14, 4 }
  0x8e   :  { %v43_v19 = vshrl.u32 %v265_v17, %v40_v13  ;;  %v46_v21 = vshrl.u32 %v266_v20, %v40_v13  ;;  %v49_v24 = vshrl.u32 %v267_v23, %v40_v13  ;;  %v52_v27 = vshrl.u32 %v268_v26, %v40_v13 }
  0x8f   :  { %v55_v30 = vshrl.u32 %v269_v29, %v40_v13  ;;  %v41_v40 = vshrl.u32 %v264_v15, %v40_v13  ;;  %vm59_vm3 = vcmp.lt.s32.totalorder %v38_v14, 3  ;;  %vm58_vm4 = vcmp.lt.s32.totalorder %v38_v14, 2 }
  0x90   :  { %v44_v32 = vor.u32 %v43_v19, %v42_v16  ;;  %v47_v33 = vor.u32 %v46_v21, %v45_v18  ;;  %v50_v34 = vor.u32 %v49_v24, %v48_v22  ;;  %v53_v35 = vor.u32 %v52_v27, %v51_v25 }
  0x91   :  { %v56_v36 = vor.u32 %v55_v30, %v54_v28 }
  0x92   :  { %v62_v37 = vsel %vm60_vm2, %v50_v34, 2102212464  ;;  %v65_v38 = vsel %vm57_vm1, %v44_v32, %v47_v33  ;;  %v69_v39 = vsel %vm57_vm1, %v47_v33, %v50_v34  ;;  %v66_v41 = vsel %vm60_vm2, %v53_v35, 920167782 }
  0x93   :  { %v70_v42 = vsel %vm60_vm2, %v56_v36, 1326507024  ;;  %v67_v43 = vsel %vm59_vm3, %v50_v34, %v66_v41  ;;  %v61_v46 = vsel %vm57_vm1, %v41_v40, %v44_v32  ;;  %v63_v47 = vsel %vm59_vm3, %v47_v33, %v62_v37 }
  0x94   :  { %v71_v44 = vsel %vm59_vm3, %v53_v35, %v70_v42  ;;  %v68_v48 = vsel %vm58_vm4, %v65_v38, %v67_v43  ;;  %v64_v54 = vsel %vm58_vm4, %v61_v46, %v63_v47 }
  0x95   :  { %v72_v49 = vsel %vm58_vm4, %v69_v39, %v71_v44  ;;  %v300_v52 = vmul.u32.u64.low %v73_v45, %v68_v48  ;;  %v301_v53 = vmul.u32.u64.high %v73_v45, %v68_v48, %v300_v52  ;;  %v80_v56 = vmul.u32 %v73_v45, %v64_v54 }
  0x96   :  { %v297_v50 = vmul.u32.u64.low %v73_v45, %v72_v49  ;;  %v298_v51 = vmul.u32.u64.high %v73_v45, %v72_v49, %v297_v50 }
  0x97   :  { %v83_v55 = vadd.s32 1, %v301_v53 }
  0x98   :  { %vm82_vm5 = vc.u32 %v298_v51, %v300_v52  ;;  %v81_v5 = vadd.s32 %v300_v52, %v298_v51 }
  0x99   :  { %v84_v57 = vsel %vm82_vm5, %v83_v55, %v301_v53 }
  0x9a   :  { %v85_v58 = vadd.s32 %v84_v57, %v80_v56 }
  0x9c   :  { %v86_v59 = vadd.s32 536870912, %v85_v58 }
  0x9e   :  { %v87_v60 = vshrl.u32 %v86_v59, 30 }
  0xa0   :  { %v88_v61 = vshll.u32 %v87_v60, 30  ;;  %v111_v19 = vsub.s32 4, %v87_v60 }
  0xa2   :  { %v89_v62 = vsub.s32 %v85_v58, %v88_v61  ;;  %v112_v22 = vsel %vm27_vm7, %v111_v19, %v87_v60 }
  0xa3   :  { %v114_v23 = vsel %vm26_vm8, 0, %v112_v22 }
  0xa4   :  { %v91_v63 = vsub.s32 0, %v89_v62  ;;  %v118_v24 = vadd.s32 3, %v114_v23  ;;  %v223_v26 = vand.u32 3, %v114_v23 }
  0xa6   :  { %v240_v0 = vmin.u32 %v91_v63, %v89_v62  ;;  %v119_v25 = vand.u32 3, %v118_v24  ;;  %vm228_vm10 = vcmp.eq.s32.totalorder %v223_v26, 2  ;;  %vm225_vm12 = vcmp.eq.s32.totalorder %v223_v26, 0 }
  0xa7   :  { %vm224_vm14 = vcmp.lt.s32.totalorder %v223_v26, 2 }
  0xa8   :  { %v93_v1 = vclz %v240_v0  ;;  %vm124_vm9 = vcmp.eq.s32.totalorder %v119_v25, 2  ;;  %vm121_vm11 = vcmp.eq.s32.totalorder %v119_v25, 0  ;;  %vm120_vm13 = vcmp.lt.s32.totalorder %v119_v25, 2 }
  0xaa   :  { %v241_v2 = vadd.s32 4294967294, %v93_v1 }
  0xac   :  { %vm242_vm6 = vcmp.lt.s32.totalorder %v241_v2, 0 }
  0xad   :  { %v96_v3 = vsel %vm242_vm6, 0, %v241_v2 }
  0xae   :  { %v97_v6 = vsub.s32 32, %v96_v3  ;;  %v101_v7 = vsub.s32 4294967266, %v96_v3  ;;  %v98_v8 = vshll.u32 %v89_v62, %v96_v3 }
  0xb0   :  { %v99_v10 = vshrl.u32 %v81_v5, %v97_v6  ;;  %v102_v11 = vadd.s32 127, %v101_v7 }
  0xb2   :  { %v100_v12 = vor.u32 %v99_v10, %v98_v8  ;;  %v103_v13 = vshll.u32 %v102_v11, 23 }
  0xb4   :  { %v104_v14 = vor.u32 4788187, %v103_v13  ;;  %v107_v16 = vcvt.s32.f32 %v100_v12 }
  0xb6   :  { %v105_v15 = vand.u32 2147483647, %v104_v14 }
  0xb8   :  { %v108_v17 = vmul.f32 %v107_v16, %v105_v15 }
  0xba   :  { %v109_v18 = vxor.u32 2147483648, %v108_v17 }
  0xbc   :  { %v110_v20 = vsel %vm27_vm7, %v109_v18, %v108_v17 }
  0xbd   :  { %v113_v21 = vsel %vm26_vm8, %v291_v4, %v110_v20 }
  0xbe   :  { %259 = vcosq.f32 %v113_v21 }
  0xbf   :  { %261 = vsinq.f32 %v113_v21 }
  0xcb   :  { %v260_v27 = vpop.eup %259 }
  0xcc   :  { %v262_v28 = vpop.eup %261  ;;  %v125_v29 = vxor.u32 2147483648, %v260_v27 }
  0xcd   :  { %v122_v30 = vxor.u32 2147483648, %v262_v28 }
  0xce   :  { %v126_v31 = vsel %vm124_vm9, %v125_v29, %v262_v28  ;;  %v230_v9 = vsel %vm228_vm10, %v125_v29, %v262_v28 }
  0xcf   :  { %v123_v32 = vsel %vm121_vm11, %v260_v27, %v122_v30  ;;  %v227_v33 = vsel %vm225_vm12, %v260_v27, %v122_v30 }
  0xd0   :  { %v127_v34 = vsel %vm120_vm13, %v123_v32, %v126_v31  ;;  %v231_v35 = vsel %vm224_vm14, %v227_v33, %v230_v9 }
  0xd1   :  { %v128_v36 = vsel %vm117_vm15, nan, %v127_v34  ;;  %v232_v37 = vsel %vm117_vm15, nan, %v231_v35 }
  0xd2   :  { %129 = vst [vmem:[%s320_s2] sm:$0xff] %v128_v36  ;;  %233 = vst [vmem:[%s320_s2 + $0x8] sm:$0xff] %v232_v37 }

</bundles_post_ra>
